<compile_context>
chip_gen: v5e
topology: v5e:2x2
jax: 0.10.0
libtpu: 0.0.40
codegen_flags: <defaults>
</compile_context>

<pallas_src>
import jax
import jax.numpy as jnp
from jax.experimental import pallas as pl
from jax.experimental.pallas import tpu as pltpu

_LANES = 128     # vreg lane width  — full, unmasked vector stores.
_SUBLANES = 8    # vreg sublane width (f32).


# --------------------------------------------------------------------------- #
# Chip-aware sizing helpers
# --------------------------------------------------------------------------- #
def _vmem_limit_bytes():
    """Scoped VMEM limit: ~3/4 of physical per-core VMEM, capped at 96 MiB."""
    physical = 64 * 1024 * 1024  # conservative fallback (v7x per-TC VMEM)
    try:
        info = pltpu.get_tpu_info()
        cap = getattr(info, "vmem_capacity_bytes", None)
        if cap:
            physical = int(cap)
    except Exception:
        pass
    return min((physical * 3) // 4, 96 * 1024 * 1024)


# --------------------------------------------------------------------------- #
# Pallas kernel
# --------------------------------------------------------------------------- #
def _mish_kernel(x_ref, o_ref):
    """Elementwise Mish on one (tile_rows, 128) block."""
    x = x_ref[...].astype(jnp.float32)
    t = jnp.exp(-jnp.abs(x))          # t in (0, 1] — no overflow possible.
    t2 = t * t
    pos = x >= 0.0
    num = jnp.where(pos, 1.0 + 2.0 * t, 2.0 * t + t2)
    den = jnp.where(pos, 1.0 + 2.0 * t + 2.0 * t2, 2.0 + 2.0 * t + t2)
    o_ref[...] = (x * (num / den)).astype(o_ref.dtype)


# --------------------------------------------------------------------------- #
# 2-D driver: (rows, 128) slab -> (rows, 128) slab
# --------------------------------------------------------------------------- #
def _mish_2d(x2):
    rows, lanes = x2.shape
    itemsize = jnp.dtype(x2.dtype).itemsize
    vmem_limit = _vmem_limit_bytes()

    # Input + output blocks, each double-buffered -> 4 block-sized VMEM
    # buffers; keep them within ~2/3 of the scoped limit for Mosaic headroom.
    # (v6e/v5e: ~16 MiB blocks; v7x: ~8 MiB blocks.)
    block_budget = max(_SUBLANES * lanes * itemsize, (vmem_limit * 2 // 3) // 4)
    tile = max(_SUBLANES,
               (block_budget // (lanes * itemsize)) // _SUBLANES * _SUBLANES)

    # Keep >= 2 grid steps when there is enough data (v7x has 2 TensorCores;
    # a 1-step grid forfeits half the chip).
    if rows >= 2 * _SUBLANES:
        half = ((pl.cdiv(rows, 2) + _SUBLANES - 1) // _SUBLANES) * _SUBLANES
        tile = min(tile, half)
    tile = min(tile, ((rows + _SUBLANES - 1) // _SUBLANES) * _SUBLANES)

    grid = pl.cdiv(rows, tile)
    return pl.pallas_call(
        _mish_kernel,
        out_shape=jax.ShapeDtypeStruct((rows, lanes), x2.dtype),
        grid=(grid,),
        in_specs=[pl.BlockSpec((tile, lanes), lambda i: (i, 0))],
        out_specs=pl.BlockSpec((tile, lanes), lambda i: (i, 0)),
        compiler_params=pltpu.CompilerParams(
            dimension_semantics=("parallel",),
            vmem_limit_bytes=vmem_limit,
        ),
    )(x2)


# --------------------------------------------------------------------------- #
# Public wrapper
# --------------------------------------------------------------------------- #
def mish(x):
    """Mish forward, matching `x * tanh(F.softplus(x))` for any input shape."""
    orig_shape, dtype = x.shape, x.dtype
    n = x.size
    if n == 0:
        return x

    rows = pl.cdiv(n, _LANES)

    # Fast path: zero-copy reshape in / reshape out — no pad / slice copies.
    if n % _LANES == 0 and rows % _SUBLANES == 0:
        out2 = _mish_2d(x.reshape(rows, _LANES))
        return out2.reshape(orig_shape)

    # Ragged path: pad the flat array up to an (8, 128)-aligned slab.
    # mish(0) == 0, so zero padding is harmless; the padded tail is sliced off.
    rows_p = ((rows + _SUBLANES - 1) // _SUBLANES) * _SUBLANES
    pad = rows_p * _LANES - n
    xf = jnp.ravel(x)
    if pad:
        xf = jnp.pad(xf, (0, pad))
    out2 = _mish_2d(xf.reshape(rows_p, _LANES))
    return out2.reshape(-1)[:n].reshape(orig_shape)


def mish_reference(x):
    """Pure-JAX (XLA) reference for validation."""
    return x * jnp.tanh(jax.nn.softplus(x))


# --------------------------------------------------------------------------- #
# Self-test
# --------------------------------------------------------------------------- #
if __name__ == "__main__":
    key = jax.random.PRNGKey(0)
    # Small shape consistent with a conv-feature-map activation: (N, C, H, W).
    x = jax.random.normal(key, (2, 4, 16, 16), jnp.float32) * 3.0

    y = jax.block_until_ready(mish(x))          # fast path, 2 grid steps
    ref = mish_reference(x)
    assert y.shape == x.shape, (y.shape, x.shape)
    assert y.dtype == x.dtype
    assert bool(jnp.all(jnp.isfinite(y)))
    assert bool(jnp.allclose(y, ref, rtol=1e-5, atol=1e-5)), \
        float(jnp.max(jnp.abs(y - ref)))

    # Also exercise a ragged shape that needs padding + multiple grid steps.
    key2 = jax.random.PRNGKey(1)
    x2 = jax.random.normal(key2, (3, 5, 17, 13), jnp.float32) * 2.0
    y2 = jax.block_until_ready(mish(x2))
    assert bool(jnp.allclose(y2, mish_reference(x2), rtol=1e-5, atol=1e-5))

    print("KERNEL_OK")
</pallas_src>

<mosaic_0001>
module attributes {stable_mosaic.version = 11 : i64} {
  func.func @_mish_kernel(%arg0: i32, %arg1: memref<8x128xf32, #tpu.memory_space<vmem>>, %arg2: memref<8x128xf32, #tpu.memory_space<vmem>>) attributes {dimension_semantics = [#tpu.dimension_semantics<parallel>], iteration_bounds = array<i64: 2>, scalar_prefetch = 0 : i64, scratch_operands = 0 : i64, tpu.core_type = #tpu.core_type<tc>, window_params = [{transform_indices = @transform_0, window_bounds = array<i64: 8, 128>}, {transform_indices = @transform_1, window_bounds = array<i64: 8, 128>}]} {
    %c0 = arith.constant 0 : index
    %c0_0 = arith.constant 0 : index
    %0 = vector.load %arg1[%c0, %c0_0] : memref<8x128xf32, #tpu.memory_space<vmem>>, vector<8x128xf32>
    %1 = math.absf %0 : vector<8x128xf32>
    %cst = arith.constant 0.000000e+00 : f32
    %2 = vector.broadcast %cst : f32 to vector<8x128xf32>
    %3 = arith.subf %2, %1 : vector<8x128xf32>
    %4 = math.exp %3 : vector<8x128xf32>
    %5 = arith.mulf %4, %4 : vector<8x128xf32>
    %cst_1 = arith.constant 0.000000e+00 : f32
    %6 = vector.broadcast %cst_1 : f32 to vector<8x128xf32>
    %7 = arith.cmpf oge, %0, %6 : vector<8x128xf32>
    %cst_2 = arith.constant 2.000000e+00 : f32
    %8 = vector.broadcast %cst_2 : f32 to vector<8x128xf32>
    %9 = arith.mulf %8, %4 : vector<8x128xf32>
    %cst_3 = arith.constant 1.000000e+00 : f32
    %10 = vector.broadcast %cst_3 : f32 to vector<8x128xf32>
    %11 = arith.addf %10, %9 : vector<8x128xf32>
    %cst_4 = arith.constant 2.000000e+00 : f32
    %12 = vector.broadcast %cst_4 : f32 to vector<8x128xf32>
    %13 = arith.mulf %12, %4 : vector<8x128xf32>
    %14 = arith.addf %13, %5 : vector<8x128xf32>
    %15 = arith.select %7, %11, %14 : vector<8x128xi1>, vector<8x128xf32>
    %cst_5 = arith.constant 2.000000e+00 : f32
    %16 = vector.broadcast %cst_5 : f32 to vector<8x128xf32>
    %17 = arith.mulf %16, %4 : vector<8x128xf32>
    %cst_6 = arith.constant 1.000000e+00 : f32
    %18 = vector.broadcast %cst_6 : f32 to vector<8x128xf32>
    %19 = arith.addf %18, %17 : vector<8x128xf32>
    %cst_7 = arith.constant 2.000000e+00 : f32
    %20 = vector.broadcast %cst_7 : f32 to vector<8x128xf32>
    %21 = arith.mulf %20, %5 : vector<8x128xf32>
    %22 = arith.addf %19, %21 : vector<8x128xf32>
    %cst_8 = arith.constant 2.000000e+00 : f32
    %23 = vector.broadcast %cst_8 : f32 to vector<8x128xf32>
    %24 = arith.mulf %23, %4 : vector<8x128xf32>
    %cst_9 = arith.constant 2.000000e+00 : f32
    %25 = vector.broadcast %cst_9 : f32 to vector<8x128xf32>
    %26 = arith.addf %25, %24 : vector<8x128xf32>
    %27 = arith.addf %26, %5 : vector<8x128xf32>
    %28 = arith.select %7, %22, %27 : vector<8x128xi1>, vector<8x128xf32>
    %29 = arith.divf %15, %28 : vector<8x128xf32>
    %30 = arith.mulf %0, %29 : vector<8x128xf32>
    %c0_10 = arith.constant 0 : index
    %c0_11 = arith.constant 0 : index
    %31 = vector.load %arg2[%c0_10, %c0_11] : memref<8x128xf32, #tpu.memory_space<vmem>>, vector<8x128xf32>
    tpu.vector_store %arg2[%c0_10, %c0_11], %30 {strides = array<i32>} : memref<8x128xf32, #tpu.memory_space<vmem>>, vector<8x128xf32>,
    return
  }
  func.func @transform_0(%arg0: i32) -> (i32, i32) {
    %c0_i32 = arith.constant 0 : i32
    %c0_i32_0 = arith.constant 0 : i32
    return %arg0, %c0_i32 : i32, i32
  }
  func.func @transform_1(%arg0: i32) -> (i32, i32) {
    %c0_i32 = arith.constant 0 : i32
    %c0_i32_0 = arith.constant 0 : i32
    return %arg0, %c0_i32 : i32, i32
  }
}

</mosaic_0001>

<bundles_post_ra>
// kernel: tpu_custom_call.1
= control target key start
LH: loop header
LB: loop body
LE: loop exit
PB: predicated region body
PF: predicated region fallthrough
CT: control target
= control target key end

     0   :  { %6 = vsyncpa [#allocation3], 0  ;;  %s556_s0 = inlined_call_operand.hbm [shape: f32[16,128], index: 0, kind: input, shape index: {}]   ;;  %s557_s1 = inlined_call_operand.hbm [shape: f32[16,128], index: 1, kind: output, shape index: {}]  }
   0x1   :  { %8 = vsyncpa [#allocation3 + $0x1], 0 }
   0x2   :  { %9 = vsyncpa [#allocation4], 0 }
   0x3   :  { %11 = vsyncpa [#allocation4 + $0x1], 0  ;;  %s423_s6 = smov 0   ;;  %s425_s7 = smov 0  }
   0x4   :  { %s427_s8 = smov 0   ;;  %s429_s9 = smov 0  }
   0x5 LB: > { %s444_s10 = sadd.s32 4294967295, %s411_s9   ;;  %s253_s11 = sadd.s32 4294967294, %s411_s9   ;;  %s411_s9 = sphi %s429_s9, %s567_s9   ;;  %s407_s8 = sphi %s427_s8, %s566_s8   ;;  %s403_s7 = sphi %s425_s7, %s565_s7   ;;  %s399_s6 = sphi %s423_s6, %s564_s6  }
   0x6   : > { %s448_s12 = sadd.s32 1, %s411_s9   ;;  %s24_s13 = sadd.s32 1, %s407_s8 }
   0x7   : > { %s21_s14 = ssub.s32 %s411_s9, %s448_s12  ;;  %p31_p0 = scmp.ne.s32.totalorder %s407_s8, %s403_s7 }
   0x8   : > { %p22_p1 = scmp.eq.s32.totalorder %s21_s14, 0  ;;  %p32_p2 = scmp.eq.s32.totalorder %s411_s9, 0 }
   0x9   : > { %p37_p3 = scmp.ne.s32.totalorder %s403_s7, %s399_s6  ;;  %p38_p4 = scmp.eq.s32.totalorder %s444_s10, 0 }
   0xa   : > { %s460_s15 = scalar_select %p22_p1, %s407_s8, %s24_s13  }
   0xb   : > { %p462_p5 = por %p32_p2, %p31_p0  ;;  %p466_p6 = por %p38_p4, %p37_p3 }
   0xc   : > { %p61_p7 = scmp.eq.s32.totalorder %s444_s10, 1  ;;  %p67_p8 = scmp.eq.s32.totalorder %s253_s11, 1 }
   0xd   : > { %p277_p10 = scmp.lt.s32.totalorder %s411_s9, 2  ;;  %s87_s20 = sand.u32 1, %s407_s8  }
   0xe   : > { %p473_p11 = por %p61_p7, %p31_p0  ;;  %p477_p12 = por %p67_p8, %p37_p3 }
   0xf   : > { %s257_s21 = sshll.u32 %s411_s9, 3  ;;  %s256_s22 = sshll.u32 %s87_s20, 3 }
  0x10   : > { %s95_s25 = scalar_lea.hbm %s556_s0, %s257_s21  ;;  %s91_s27 = scalar_lea.vmem [#allocation2], %s256_s22 }
  0x11   : > { %s97_s26 = sshll.u32 %s95_s25, 4  ;;  %s99_s28 = sshll.u32 %s91_s27, 4  ;;  %s98_s26 = int_to_ptr.hbm [resolvable:$true] %s97_s26  ;;  %s100_s28 = int_to_ptr.vmem [resolvable:$true] %s99_s28 }
  0x12   : > { %p488_p13 = pnand %p277_p10, %p462_p5  ;;  %p258_p0 = scmp.ge.s32.totalorder %s411_s9, 1 }
  0x13   : > { %p104_p1 = scmp.lt.s32.totalorder %s411_s9, 3  ;;  %s88_s30 = scalar_lea.sflag [#allocation3], %s87_s20 }
  0x14   : > { %s315_s2 = sshra.s32 %s98_s26, 4  ;;  %p319_p3 = pneg %p488_p13  ;;  %s316_s2 = int_to_ptr.hbm [resolvable:$true] %s315_s2 }
  0x15   : > { %s317_s3 = scalar_lea.hbm %s316_s2, 8  ;;  %s322_s11 = scalar_lea.hbm %s556_s0, 16 }
  0x16   : > { %p318_p2 = scmp.ne.s32.totalorder %s316_s2, %s317_s3  ;;  %p323_p5 = scmp.lt.s32.totalorder %s316_s2, %s556_s0 }
  0x17   : > { %p324_p8 = scmp.lt.s32.totalorder %s322_s11, %s317_s3 }
  0x18   : > { %p320_p4 = pnand %p319_p3, %p318_p2 }
  0x19   : > { %p325_p10 = por %p324_p8, %p323_p5 }
  0x1a   : > { %p321_p7 = pneg %p320_p4 }
  0x1c   : > { %p326_p9 = pnand %p325_p10, %p321_p7 }
  0x1e   : > { %329 = shalt.err (!%p326_p9)
}
  0x1f   : > { %272 = dma.hbm_to_vmem [thread:$0]  (!%p488_p13), %s98_s26, 128, %s100_s28, %s88_s30  }
  0x20   : > { %p105_p2 = pnand %p258_p0, %p104_p1 }
  0x21   : > { %s509_s16 = sand.u32 (!%p105_p2), 1, %s403_s7  }
  0x22   : > { %108 = sbr.rel (%p105_p2) target bundleno = 85 (0x55), region = 24  ;;  %s259_s20 = sshll.u32 (!%p105_p2), %s509_s16, 3 }
  0x23   : > { %s111_s21 = scalar_lea.sflag (!%p105_p2), [#allocation3], %s509_s16  ;;  %s114_s22 = scalar_lea.vmem (!%p105_p2), [#allocation2], %s259_s20 }
  0x27   : > { %390 = dma.done.wait (%p466_p6), %s111_s21, 128  }
  0x28   : > { %392 = vsyncadd (%p466_p6), %s111_s21, 4294967168  ;;  %v134_v0 = vld [vmem:[%s114_s22] sm:$0xff]  ;;  %s262_s17 = sshll.u32 %s444_s10, 3  ;;  %s133_s26 = scalar_lea.vmem [#allocation5], %s259_s20 }
  0x29   : > { %v135_v1 = vand.u32 2147483647, %v134_v0  ;;  %vm140_vm0 = vcmp.ge.f32.partialorder %v134_v0, 0.0  ;;  %s178_s25 = scalar_lea.hbm %s557_s1, %s262_s17  ;;  %s180_s27 = sshll.u32 %s133_s26, 4  ;;  %s181_s27 = int_to_ptr.vmem [resolvable:$true] %s180_s27 }
  0x2a   : > { %s182_s28 = sshll.u32 %s178_s25, 4  ;;  %s168_s10 = scalar_lea.sflag [#allocation4], %s509_s16  ;;  %s183_s28 = int_to_ptr.hbm [resolvable:$true] %s182_s28 }
  0x2b   : > { %v136_v2 = vsub.f32 0.0, %v135_v1  ;;  %s359_s29 = sshra.s32 %s183_s28, 4  ;;  %s365_s4 = scalar_lea.hbm %s557_s1, 16  ;;  %s360_s29 = int_to_ptr.hbm [resolvable:$true] %s359_s29 }
  0x2c   : > { %s361_s30 = scalar_lea.hbm %s360_s29, 8  ;;  %p366_p0 = scmp.lt.s32.totalorder %s360_s29, %s557_s1 }
  0x2d   : > { %v137_v3 = vmul.f32 1.442695, %v136_v2  ;;  %p362_p6 = scmp.ne.s32.totalorder %s360_s29, %s361_s30  ;;  %p367_p1 = scmp.lt.s32.totalorder %s365_s4, %s361_s30 }
  0x2f   : > { %311 = vpow2.f32 %v137_v3  ;;  %p363_p9 = pnand %p362_p6, %p473_p11  ;;  %p368_p3 = por %p367_p1, %p366_p0 }
  0x31   : > { %p364_p13 = pneg %p363_p9 }
  0x33   : > { %p369_p4 = pnand %p368_p3, %p364_p13 }
  0x35   : > { %v312_v4 = vpop.eup %311 }
  0x36   : > { %v139_v5 = vmul.f32 %v312_v4, %v312_v4  ;;  %v141_v6 = vmul.f32 2.0, %v312_v4 }
  0x38   : > { %v142_v7 = vadd.f32 1.0, %v141_v6  ;;  %v145_v8 = vmul.f32 2.0, %v139_v5  ;;  %v147_v9 = vadd.f32 2.0, %v141_v6  ;;  %v143_v18 = vadd.f32 %v141_v6, %v139_v5 }
  0x3a   : > { %v146_v10 = vadd.f32 %v145_v8, %v142_v7  ;;  %v148_v11 = vadd.f32 %v147_v9, %v139_v5  ;;  %v144_v22 = vsel %vm140_vm0, %v142_v7, %v143_v18 }
  0x3c   : > { %v149_v12 = vsel %vm140_vm0, %v146_v10, %v148_v11 }
  0x3d   : > { %313 = vrcp.f32 %v149_v12  ;;  %v161_v15 = vand.u32 2147483648, %v149_v12  ;;  %vm155_vm1 = vweird.f32 %v149_v12  ;;  %v159_v17 = vand.u32 2147483647, %v149_v12 }
  0x3f   : > { %v162_v20 = vor.u32 1.1754944e-38, %v161_v15  ;;  %vm160_vm4 = vcmp.eq.f32.partialorder %v159_v17, 8.507059e+37 }
  0x43   : > { %v314_v13 = vpop.eup %313 }
  0x44   : > { %v151_v14 = vmul.f32 %v314_v13, %v149_v12  ;;  %vm156_vm2 = vweird.f32 %v314_v13 }
  0x45   : > { %vm157_vm3 = vmor %vm155_vm1, %vm156_vm2 }
  0x46   : > { %v152_v16 = vsub.f32 1.0, %v151_v14 }
  0x48   : > { %v153_v19 = vmul.f32 %v314_v13, %v152_v16 }
  0x4a   : > { %v154_v21 = vadd.f32 %v314_v13, %v153_v19 }
  0x4c   : > { %v158_v23 = vsel %vm157_vm3, %v314_v13, %v154_v21 }
  0x4d   : > { %v163_v24 = vsel %vm160_vm4, %v162_v20, %v158_v23 }
  0x4e   : > { %v164_v25 = vmul.f32 %v163_v24, %v144_v22 }
  0x50   : > { %v165_v26 = vmul.f32 %v164_v25, %v134_v0 }
  0x52   : > { %166 = vst [vmem:[%s133_s26] sm:$0xff] %v165_v26 }
  0x53   : > { %372 = shalt.err (!%p369_p4)
}
  0x54   : > { %267 = dma.vmem_to_hbm [thread:$0]  (%p473_p11), %s181_s27, 128, %s183_s28, %s168_s10  }
  0x55 PF: > { %s194_s13 = sand.u32 1, %s399_s6   ;;  %p563_p7 = scmp.ge.s32.totalorder %s411_s9, 2 }
  0x56   : > { %s195_s14 = scalar_lea.sflag [#allocation4], %s194_s13 }
  0x57   : > { %p274_p5 = pnand %p563_p7, %p477_p12 }
  0x59   : > { %p275_p8 = pneg %p274_p5 }
  0x5b   : > { %394 = dma.done.wait (%p275_p8), %s195_s14, 128  }
  0x5c   : > { %396 = vsyncadd (%p275_p8), %s195_s14, 4294967168  ;;  %p14_p10 = scmp.ge.s32.totalorder %s448_s12, 4   ;;  %s564_s6 = smov %s403_s7 }
  0x5d   : > { %s565_s7 = smov %s407_s8  ;;  %s566_s8 = smov %s460_s15 }
  0x5e   : > { %s567_s9 = smov %s448_s12  ;;  %16 = sbr.rel (!%p14_p10) target bundleno = 5 (0x5), region = 69 }
  0x63   :  { %201 = vsyncpa [#allocation3], 1 }
  0x64   :  { %203 = vsyncpa [#allocation3 + $0x1], 1 }
  0x65   :  { %204 = vsyncpa [#allocation4], 1 }
  0x66   :  { %206 = vsyncpa [#allocation4 + $0x1], 1 }

</bundles_post_ra>
